<compile_context>
chip_gen: v7x
topology: tpu7x:2x2x1
jax: 0.10.0
libtpu: 0.0.40
codegen_flags: <defaults>
</compile_context>

<pallas_src>
import jax
import jax.numpy as jnp
from jax import lax
from jax.experimental import pallas as pl
from jax.experimental.pallas import tpu as pltpu


def _decoder_kernel(x_ref, w_ref, b_ref, o_ref):
    """x_ref: (GB, g*C, TV)  w_ref: (g*O, g*C)  b_ref: (g*O, 1)  o_ref: (GB, g*O, TV)."""
    w = w_ref[...]
    # Hoist the bias broadcast out of the loop (no CSE of broadcast_in_dim).
    bias = jnp.broadcast_to(b_ref[...], (w_ref.shape[0], x_ref.shape[-1]))
    gb = x_ref.shape[0]

    def body(i, carry):
        o_ref[i] = (
            jnp.dot(w, x_ref[i], preferred_element_type=jnp.float32,
                    precision=lax.Precision.HIGHEST)
            + bias
        )
        return carry

    lax.fori_loop(0, gb, body, None, unroll=(gb <= 8))


def decoder_forward(x, w, b):
    """x: (N, M, C, T, V) float32;  w: (O, C);  b: (O,).  Returns (N, O, T, V, M)."""
    N, M, C, T, V = x.shape
    O, C_w = w.shape
    assert C == C_w, (C, C_w)
    NM, TV = N * M, T * V

    # Lane-dense last dim: pad T*V up to a multiple of 128.
    TV_pad = ((TV + 127) // 128) * 128

    # Group g consecutive samples along the contraction dim (block-diagonal
    # weight) to fill the MXU K dimension; shrink g for tiny batches so there
    # are still >= 2 groups (keeps the grid >= 2 steps for v7x megacore).
    g = 4
    while g > 1 and NM < 2 * g:
        g //= 2

    NG_min = pl.cdiv(NM, g)            # groups of g samples (before padding)

    # Groups per grid step: target ~2 MiB activation blocks (amortizes the
    # per-step overhead), but keep >= 2 grid steps whenever possible.
    grp_bytes = g * C * TV_pad * 4
    gb_blk = max(1, (2 * 1024 * 1024) // grp_bytes)
    if NG_min >= 2:
        gb_blk = max(1, min(gb_blk, pl.cdiv(NG_min, 2)))
    else:
        gb_blk = 1

    NG = pl.cdiv(NG_min, gb_blk) * gb_blk    # groups after padding
    NM_pad = NG * g
    grid = (NG // gb_blk,)

    # HBM-side free reshapes / cheap zero padding.
    x2 = x.reshape(NM, C, TV).astype(jnp.float32)
    if TV_pad != TV:
        x2 = jnp.pad(x2, ((0, 0), (0, 0), (0, TV_pad - TV)))
    if NM_pad != NM:
        x2 = jnp.pad(x2, ((0, NM_pad - NM), (0, 0), (0, 0)))
    x3 = x2.reshape(NG, g * C, TV_pad)       # contiguous -> free reshape

    # Block-diagonal weight (g copies of W) and tiled bias, built host-side.
    w32 = w.astype(jnp.float32)
    b32 = b.astype(jnp.float32)
    w_bd = jnp.kron(jnp.eye(g, dtype=jnp.float32), w32)       # (g*O, g*C)
    b_bd = jnp.tile(b32, g).reshape(g * O, 1)                  # (g*O, 1)

    out = pl.pallas_call(
        _decoder_kernel,
        out_shape=jax.ShapeDtypeStruct((NG, g * O, TV_pad), jnp.float32),
        grid=grid,
        in_specs=[
            pl.BlockSpec((gb_blk, g * C, TV_pad), lambda i: (i, 0, 0)),  # activations
            pl.BlockSpec((g * O, g * C), lambda i: (0, 0)),              # block-diag weight
            pl.BlockSpec((g * O, 1), lambda i: (0, 0)),                  # bias
        ],
        out_specs=pl.BlockSpec((gb_blk, g * O, TV_pad), lambda i: (i, 0, 0)),
        compiler_params=pltpu.CompilerParams(
            dimension_semantics=("parallel",),
            vmem_limit_bytes=32 * 1024 * 1024,
        ),
    )(x3, w_bd, b_bd)

    # (NG, g*O, TV_pad) -> (NM_pad, O, TV_pad) is a free row-major reshape;
    # drop padding and apply the PyTorch output permute wrapper-side.
    out = out.reshape(NM_pad, O, TV_pad)[:NM, :, :TV]
    return out.reshape(N, M, O, T, V).transpose(0, 2, 3, 4, 1)


# ----------------------------------------------------------------------------
# Plain-JAX reference mirroring the PyTorch Decoder forward, for verification.
# ----------------------------------------------------------------------------
def reference_forward(x, w, b):
    hp = lax.Precision.HIGHEST
    xp = jnp.transpose(x, (0, 1, 3, 4, 2))                        # (N, M, T, V, C)
    y = jnp.einsum('nmtvc,oc->nmtvo', xp, w, precision=hp) + b    # Linear(64, 3)
    return jnp.transpose(y, (0, 4, 2, 3, 1))                      # (N, O, T, V, M)


if __name__ == "__main__":
    N, M, C, T, V = 2, 2, 64, 16, 16          # C fixed to 64 by the module's Linear(64, 3)
    O = 3
    key = jax.random.PRNGKey(0)
    kx, kw, kb = jax.random.split(key, 3)
    x = jax.random.normal(kx, (N, M, C, T, V), dtype=jnp.float32)
    w = (jax.random.normal(kw, (O, C), dtype=jnp.float32) / jnp.sqrt(float(C))).astype(jnp.float32)
    b = (jax.random.normal(kb, (O,), dtype=jnp.float32) * 0.1).astype(jnp.float32)

    out = jax.block_until_ready(decoder_forward(x, w, b))
    ref = jax.block_until_ready(reference_forward(x, w, b))

    assert out.shape == (N, O, T, V, M), out.shape
    if not jnp.allclose(out, ref, atol=1e-4, rtol=1e-4):
        max_err = float(jnp.max(jnp.abs(out - ref)))
        raise AssertionError(f"Pallas output mismatch, max abs err = {max_err}")

    print("KERNEL_OK")
</pallas_src>

<mosaic_0001>
module attributes {stable_mosaic.version = 11 : i64} {
  func.func @_decoder_kernel(%arg0: i32, %arg1: memref<1x128x256xf32, #tpu.memory_space<vmem>>, %arg2: memref<6x128xf32, #tpu.memory_space<vmem>>, %arg3: memref<6x1xf32, #tpu.memory_space<vmem>>, %arg4: memref<1x6x256xf32, #tpu.memory_space<vmem>>) attributes {dimension_semantics = [#tpu.dimension_semantics<parallel>], iteration_bounds = array<i64: 2>, scalar_prefetch = 0 : i64, scratch_operands = 0 : i64, tpu.core_type = #tpu.core_type<tc>, window_params = [{transform_indices = @transform_0, window_bounds = array<i64: 1, 128, 256>}, {pipeline_mode = #tpu.pipeline_mode<synchronous>, transform_indices = @transform_1, window_bounds = array<i64: 6, 128>}, {pipeline_mode = #tpu.pipeline_mode<synchronous>, transform_indices = @transform_2, window_bounds = array<i64: 6, 1>}, {transform_indices = @transform_3, window_bounds = array<i64: 1, 6, 256>}]} {
    %c0 = arith.constant 0 : index
    %c0_0 = arith.constant 0 : index
    %0 = vector.load %arg2[%c0, %c0_0] : memref<6x128xf32, #tpu.memory_space<vmem>>, vector<6x128xf32>
    %c0_1 = arith.constant 0 : index
    %c0_2 = arith.constant 0 : index
    %1 = vector.load %arg3[%c0_1, %c0_2] : memref<6x1xf32, #tpu.memory_space<vmem>>, vector<6x1xf32>
    %2 = vector.shape_cast %1 : vector<6x1xf32> to vector<6x1xf32>
    %3 = vector.broadcast %2 : vector<6x1xf32> to vector<6x256xf32>
    %c0_i32 = arith.constant 0 : i32
    %4 = arith.index_cast %c0_i32 : i32 to index
    %c0_3 = arith.constant 0 : index
    %c0_4 = arith.constant 0 : index
    %5 = vector.load %arg1[%4, %c0_3, %c0_4] : memref<1x128x256xf32, #tpu.memory_space<vmem>>, vector<1x128x256xf32>
    %6 = vector.shape_cast %5 : vector<1x128x256xf32> to vector<128x256xf32>
    %cst = arith.constant dense<0.000000e+00> : vector<6x256xf32>
    %7 = tpu.matmul %0, %6, %cst {dimension_numbers = #tpu.dot_dimension_numbers<[1], [0], [0], [1], [0, 0, 1, 1], [], []>, precision = #tpu.contract_precision<fp32>} : vector<6x128xf32>, vector<128x256xf32>, vector<6x256xf32> -> vector<6x256xf32>
    %8 = arith.addf %7, %3 : vector<6x256xf32>
    %9 = arith.index_cast %c0_i32 : i32 to index
    %c0_5 = arith.constant 0 : index
    %c0_6 = arith.constant 0 : index
    %10 = vector.load %arg4[%9, %c0_5, %c0_6] : memref<1x6x256xf32, #tpu.memory_space<vmem>>, vector<1x6x256xf32>
    %11 = vector.shape_cast %10 : vector<1x6x256xf32> to vector<6x256xf32>
    %12 = vector.shape_cast %8 : vector<6x256xf32> to vector<1x6x256xf32>
    tpu.vector_store %arg4[%9, %c0_5, %c0_6], %12 {strides = array<i32>} : memref<1x6x256xf32, #tpu.memory_space<vmem>>, vector<1x6x256xf32>,
    %c1_i32 = arith.constant 1 : i32
    return
  }
  func.func @transform_0(%arg0: i32) -> (i32, i32, i32) {
    %c0_i32 = arith.constant 0 : i32
    %c0_i32_0 = arith.constant 0 : i32
    %c0_i32_1 = arith.constant 0 : i32
    return %arg0, %c0_i32, %c0_i32_0 : i32, i32, i32
  }
  func.func @transform_1(%arg0: i32) -> (i32, i32) {
    %c0_i32 = arith.constant 0 : i32
    %c0_i32_0 = arith.constant 0 : i32
    %c0_i32_1 = arith.constant 0 : i32
    return %c0_i32, %c0_i32_0 : i32, i32
  }
  func.func @transform_2(%arg0: i32) -> (i32, i32) {
    %c0_i32 = arith.constant 0 : i32
    %c0_i32_0 = arith.constant 0 : i32
    %c0_i32_1 = arith.constant 0 : i32
    return %c0_i32, %c0_i32_0 : i32, i32
  }
  func.func @transform_3(%arg0: i32) -> (i32, i32, i32) {
    %c0_i32 = arith.constant 0 : i32
    %c0_i32_0 = arith.constant 0 : i32
    %c0_i32_1 = arith.constant 0 : i32
    return %arg0, %c0_i32, %c0_i32_0 : i32, i32, i32
  }
}

</mosaic_0001>

<bundles_post_ra>
// kernel: tpu_custom_call.1
= control target key start
LH: loop header
LB: loop body
LE: loop exit
PB: predicated region body
PF: predicated region fallthrough
CT: control target
= control target key end

     0   :  { %8 = vsyncpa [#allocation3], 0  ;;  %s1912_s0 = inlined_call_operand.hbm [shape: f32[2,128,256], index: 0, kind: input, shape index: {}]   ;;  %s1913_s1 = inlined_call_operand.vmem [shape: f32[6,128], index: 1, kind: input, shape index: {}]   ;;  %s1914_s2 = inlined_call_operand.vmem [shape: f32[6,1], index: 2, kind: input, shape index: {}]   ;;  %s1915_s3 = inlined_call_operand.vmem [shape: f32[2,6,256], index: 3, kind: output, shape index: {}]  }
   0x1   :  { %10 = vsyncpa [#allocation3 + $0x1], 0  ;;  %s1507_s12 = smov 0   ;;  %s1509_s13 = smov 0  }
   0x2   :  { %s1511_s14 = smov 0   ;;  %s1513_s15 = smov 0  }
   0x3 LB: > { %s1526_s16 = sadd.s32 4294967295, %s1480_s15   ;;  %s1529_s17 = sadd.s32 1, %s1480_s15   ;;  %s1480_s15 = sphi %s1513_s15, %s1991_s15   ;;  %s1476_s14 = sphi %s1511_s14, %s1990_s14   ;;  %s1472_s13 = sphi %s1509_s13, %s1989_s13   ;;  %s1468_s12 = sphi %s1507_s12, %s1988_s12  }
   0x4   : > { %s20_s18 = ssub.s32 %s1480_s15, %s1529_s17  ;;  %s23_s19 = sadd.s32 1, %s1476_s14 }
   0x5   : > { %p21_p0 = scmp.eq.s32.totalorder %s20_s18, 0  ;;  %p30_p1 = scmp.ne.s32.totalorder %s1476_s14, %s1472_s13 }
   0x6   : > { %p31_p2 = scmp.eq.s32.totalorder %s1480_s15, 0  ;;  %p36_p3 = scmp.ne.s32.totalorder %s1472_s13, %s1468_s12 }
   0x7   : > { %s1539_s20 = scalar_select %p21_p0, %s1476_s14, %s23_s19  }
   0x8   : > { %p32_p4 = por %p31_p2, %p30_p1  ;;  %p37_p5 = scmp.eq.s32.totalorder %s1526_s16, 0 }
   0x9   : > { %p1378_p6 = scmp.lt.s32.totalorder %s1480_s15, 2  ;;  %s134_s22 = sand.u32 1, %s1476_s14  }
   0xa   : > { %p1543_p7 = por %p37_p5, %p36_p3  ;;  %s1157_s23 = sshll.u32 %s134_s22, 8 }
   0xb   : > { %s1166_s24 = sshll.u32 %s1480_s15, 12  ;;  %s138_s28 = scalar_lea.vmem [#allocation2], %s1157_s23 }
   0xc   : > { %s1552_s27 = scalar_lea.hbm %s1912_s0, %s1166_s24  ;;  %s145_s29 = sshll.u32 %s138_s28, 4  ;;  %s1554_s29 = int_to_ptr.vmem [resolvable:$true] %s145_s29 }
   0xd   : > { %p1556_p8 = pnand %p1378_p6, %p32_p4  ;;  %s1561_s4 = scalar_lea.sflag [#allocation3], %s134_s22 }
   0xe   : > { %s1416_s5 = scalar_lea.hbm %s1552_s27, 4096  ;;  %s1421_s8 = scalar_lea.hbm %s1912_s0, 8192 }
   0xf   : > { %p1417_p10 = scmp.ne.s32.totalorder %s1552_s27, %s1416_s5  ;;  %p1418_p11 = pneg %p1556_p8 }
  0x10   : > { %p1422_p0 = scmp.lt.u32.totalorder %s1552_s27, %s1912_s0  ;;  %p1423_p1 = scmp.lt.u32.totalorder %s1421_s8, %s1416_s5 }
  0x11   : > { %p1419_p12 = pnand %p1418_p11, %p1417_p10  ;;  %p1425_p3 = scmp.lt.u32.totalorder %s1416_s5, %s1552_s27 }
  0x12   : > { %p1424_p2 = por %p1423_p1, %p1422_p0 }
  0x13   : > { %p1420_p13 = pneg %p1419_p12 }
  0x14   : > { %p1426_p4 = por %p1425_p3, %p1424_p2 }
  0x16   : > { %p1427_p5 = pnand %p1426_p4, %p1420_p13 }
  0x18   : > { %1430 = shalt.err (!%p1427_p5)
}
  0x19   : > { %s1431_s11 = scalar_lea.vmem %s1554_s29, 4096  ;;  %s1482_s12 = smov [#allocation2]  }
  0x1a   : > { %p1432_p6 = scmp.ne.s32.totalorder %s1554_s29, %s1431_s11  ;;  %s1436_s18 = sshll.u32 %s1482_s12, 4  ;;  %s1437_s18 = int_to_ptr.vmem [resolvable:$false] %s1436_s18 }
  0x1b   : > { %s1438_s19 = scalar_lea.vmem %s1437_s18, 8192  ;;  %p1439_p9 = scmp.lt.s32.totalorder %s1554_s29, %s1437_s18 }
  0x1c   : > { %p1434_p10 = pnand %p1432_p6, %p1418_p11  ;;  %p1440_p0 = scmp.lt.s32.totalorder %s1438_s19, %s1431_s11 }
  0x1e   : > { %p1435_p12 = pneg %p1434_p10  ;;  %p1441_p1 = por %p1440_p0, %p1439_p9 }
  0x20   : > { %p1442_p2 = pnand %p1441_p1, %p1435_p12 }
  0x22   : > { %1445 = shalt.err (!%p1442_p2)
}
  0x23   : > { %s1483_s22 = smov 256   ;;  %s1484_s23 = smov 16  }
  0x24   : > { %1377 = dma.hbm_to_vmem [thread:$0]  (!%p1556_p8), %s1552_s27, 4096, %s1554_s29, %s1561_s4, %s1483_s22, %s1483_s22, %s1484_s23  }
  0x25   : > { %p153_p11 = scmp.lt.s32.totalorder %s1480_s15, 3  ;;  %p1942_p13 = scmp.ge.s32.totalorder %s1480_s15, 1 }
  0x27   : > { %p154_p3 = pnand %p1942_p13, %p153_p11 }
  0x29   : > { %157 = sbr.rel (%p154_p3) target bundleno = 371 (0x173), region = 32 }
  0x30   : > { %s159_s24 = sand.u32 1, %s1472_s13  }
  0x31   : > { %s1161_s25 = sshll.u32 %s159_s24, 8  ;;  %s160_s26 = scalar_lea.sflag [#allocation3], %s159_s24 }
  0x32   : > { %s1593_s28 = scalar_lea.vmem [#allocation2], %s1161_s25 }
  0x33   : > { %1463 = dma.done.wait (%p1543_p7), %s160_s26, 4096  }
  0x34   : > { %1465 = vsyncadd (%p1543_p7), %s160_s26, 4294963200  ;;  %v1916_v0 = vmov 0.0   ;;  %v1486_v1 = vmov 0   ;;  %v199_v2 = vld [vmem:[%s1593_s28 + $0x8] sm:$0xff]  ;;  %v201_v3 = vld [vmem:[%s1593_s28 + $0x18] sm:$0xff]  ;;  %p186_p7 = scmp.lt.s32.totalorder %s1526_s16, 1 }
  0x35   : > { %326 = vmatprep.mubr.f32.mxu1 %v1916_v0  ;;  %803 = vmatprep.mubr.f32.mxu0 %v1916_v0  ;;  %v198_v4 = vld [vmem:[%s1593_s28] sm:$0xff]  ;;  %v230_v5 = vand.u32 4294901760, %v199_v2  ;;  %v234_v6 = vand.u32 4294901760, %v201_v3  ;;  %v200_v7 = vld [vmem:[%s1593_s28 + $0x10] sm:$0xff]  ;;  %v203_v9 = vld [vmem:[%s1593_s28 + $0x28] sm:$0xff] }
  0x36   : > { %1415 = vset.pattern.permute.xlu0 %v1486_v1  ;;  %v232_v8 = vand.u32 4294901760, %v198_v4  ;;  %v205_v10 = vld [vmem:[%s1593_s28 + $0x38] sm:$0xff]  ;;  %v236_v11 = vand.u32 4294901760, %v200_v7  ;;  %v238_v12 = vand.u32 4294901760, %v203_v9  ;;  %v202_v14 = vld [vmem:[%s1593_s28 + $0x20] sm:$0xff]  ;;  %v204_v15 = vld [vmem:[%s1593_s28 + $0x30] sm:$0xff] }
  0x37   : > { %v242_v13 = vand.u32 4294901760, %v205_v10  ;;  %v207_v16 = vld [vmem:[%s1593_s28 + $0x48] sm:$0xff]  ;;  %v1610_v17 = vpack.c.bf16 %v234_v6, %v230_v5  ;;  %v209_v18 = vld [vmem:[%s1593_s28 + $0x58] sm:$0xff]  ;;  %v206_v19 = vld [vmem:[%s1593_s28 + $0x40] sm:$0xff]  ;;  %v1615_v21 = vsub.f32 %v199_v2, %v230_v5  ;;  %v1624_v26 = vsub.f32 %v201_v3, %v234_v6  ;;  %s1993_s16 = smov (!%p186_p7, %s1526_s16), 1 }
  0x38   : > { %v208_v20 = vld [vmem:[%s1593_s28 + $0x50] sm:$0xff]  ;;  %v1617_v22 = vpack.c.bf16 %v236_v11, %v232_v8  ;;  %v211_v24 = vld [vmem:[%s1593_s28 + $0x68] sm:$0xff]  ;;  %v213_v25 = vld [vmem:[%s1593_s28 + $0x78] sm:$0xff]  ;;  %v240_v27 = vand.u32 4294901760, %v202_v14  ;;  %v244_v28 = vand.u32 4294901760, %v204_v15  ;;  %v246_v29 = vand.u32 4294901760, %v207_v16 }
  0x39   : > { %v1619_v23 = vpack.c.bf16 %v242_v13, %v238_v12  ;;  %1169 = vmatprep.subr.bf16.mxu1 %v1610_v17  ;;  %1265 = vmatprep.subr.bf16.mxu0 %v1610_v17  ;;  %v1628_v30 = vsub.f32 %v198_v4, %v232_v8  ;;  %v250_v31 = vand.u32 4294901760, %v209_v18  ;;  %v248_v32 = vand.u32 4294901760, %v206_v19  ;;  %v210_v38 = vld [vmem:[%s1593_s28 + $0x60] sm:$0xff]  ;;  %v212_v39 = vld [vmem:[%s1593_s28 + $0x70] sm:$0xff]  ;;  %v215_v40 = vld [vmem:[%s1593_s28 + $0x88] sm:$0xff]  ;;  %s1167_s30 = sshll.u32 %s1993_s16, 4 }
  0x3a   : > { %1943 = vst [vmem:[#allocation5_spill] sm:$0xff] %v1617_v22  ;;  %1171 = vmatpush1.bf16.msra.mxu1 %v1617_v22  ;;  %1267 = vmatpush1.bf16.msra.mxu0 %v1617_v22  ;;  %v252_v33 = vand.u32 4294901760, %v208_v20  ;;  %v1631_v34 = vsub.f32 %v200_v7, %v236_v11  ;;  %v1635_v35 = vpack.c.bf16 %v244_v28, %v240_v27  ;;  %v254_v36 = vand.u32 4294901760, %v211_v24  ;;  %v217_v45 = vld [vmem:[%s1593_s28 + $0x98] sm:$0xff]  ;;  %v214_v46 = vld [vmem:[%s1593_s28 + $0x80] sm:$0xff]  ;;  %v216_v47 = vld [vmem:[%s1593_s28 + $0x90] sm:$0xff]  ;;  %s190_s6 = scalar_lea.vmem %s1915_s3, %s1167_s30 }
  0x3b   : > { %1944 = vst [vmem:[#allocation6_spill] sm:$0xff] %v1619_v23  ;;  %1173 = vmatprep.subr.bf16.mxu1 %v1619_v23  ;;  %1269 = vmatprep.subr.bf16.mxu0 %v1619_v23  ;;  %v258_v37 = vand.u32 4294901760, %v213_v25  ;;  %v1640_v41 = vsub.f32 %v203_v9, %v238_v12  ;;  %v1642_v42 = vsub.f32 %v205_v10, %v242_v13  ;;  %v219_v52 = vld [vmem:[%s1593_s28 + $0xa8] sm:$0xff]  ;;  %v256_v54 = vand.u32 4294901760, %v210_v38  ;;  %v221_v61 = vld [vmem:[%s1593_s28 + $0xb8] sm:$0xff]  ;;  %v218_v62 = vld [vmem:[%s1593_s28 + $0xa0] sm:$0xff] }
  0x3c   : > { %1945 = vst [vmem:[#allocation7_spill] sm:$0xff] %v1635_v35  ;;  %v1644_v43 = vsub.f32 %v202_v14, %v240_v27  ;;  %v1646_v44 = vpack.c.bf16 %v250_v31, %v246_v29  ;;  %v1651_v48 = vsub.f32 %v204_v15, %v244_v28  ;;  %v1653_v49 = vsub.f32 %v207_v16, %v246_v29  ;;  %v220_v63 = vld [vmem:[%s1593_s28 + $0xb0] sm:$0xff]  ;;  %v223_v5 = vld [vmem:[%s1593_s28 + $0xc8] sm:$0xff]  ;;  %v225_v6 = vld [vmem:[%s1593_s28 + $0xd8] sm:$0xff] }
  0x3d   : > { %v1655_v50 = vsub.f32 %v209_v18, %v250_v31  ;;  %v1657_v51 = vpack.c.bf16 %v252_v33, %v248_v32  ;;  %v1662_v53 = vsub.f32 %v206_v19, %v248_v32  ;;  %v260_v55 = vand.u32 4294901760, %v212_v39  ;;  %v192_v7 = vld [vmem:[%s1914_s2] sm:$0x3f]  ;;  %v224_v18 = vld [vmem:[%s1593_s28 + $0xd0] sm:$0xff]  ;;  %v227_v32 = vld [vmem:[%s1593_s28 + $0xe8] sm:$0xff] }
  0x3e   : > { %1946 = vst [vmem:[#allocation8_spill] sm:$0xff] %v1644_v43  ;;  %1947 = vst [vmem:[#allocation9_spill] sm:$0xff] %v1646_v44  ;;  %1175 = vmatpush1.bf16.msra.mxu1 %v1635_v35  ;;  %1271 = vmatpush1.bf16.msra.mxu0 %v1635_v35  ;;  %v262_v56 = vand.u32 4294901760, %v215_v40  ;;  %v1666_v57 = vpack.c.bf16 %v258_v37, %v254_v36  ;;  %v266_v58 = vand.u32 4294901760, %v217_v45  ;;  %v264_v59 = vand.u32 4294901760, %v214_v46  ;;  %v222_v12 = vld [vmem:[%s1593_s28 + $0xc0] sm:$0xff] }
  0x3f   : > { %1948 = vst [vmem:[#allocation10_spill] sm:$0xff] %v1651_v48  ;;  %1949 = vst [vmem:[#allocation11_spill] sm:$0xff] %v1657_v51  ;;  %1177 = vmatprep.subr.bf16.mxu1 %v1646_v44  ;;  %1273 = vmatprep.subr.bf16.mxu0 %v1646_v44  ;;  %v268_v60 = vand.u32 4294901760, %v216_v47  ;;  %v1671_v1 = vsub.f32 %v208_v20, %v252_v33  ;;  %v1673_v2 = vsub.f32 %v211_v24, %v254_v36  ;;  %v229_v33 = vld [vmem:[%s1593_s28 + $0xf8] sm:$0xff]  ;;  %v226_v36 = vld [vmem:[%s1593_s28 + $0xe0] sm:$0xff] }
  0x40   : > { %1950 = vst [vmem:[#allocation12_spill] sm:$0xff] %v1662_v53  ;;  %1951 = vst [vmem:[#allocation13_spill] sm:$0xff] %v1666_v57  ;;  %v1675_v3 = vsub.f32 %v213_v25, %v258_v37  ;;  %v270_v4 = vand.u32 4294901760, %v219_v52  ;;  %v1682_v8 = vpack.c.bf16 %v260_v55, %v256_v54  ;;  %v1684_v9 = vsub.f32 %v210_v38, %v256_v54 }
  0x41   : > { %1952 = vst [vmem:[#allocation14_spill] sm:$0xff] %v1671_v1  ;;  %v1686_v10 = vsub.f32 %v212_v39, %v260_v55  ;;  %v1688_v11 = vsub.f32 %v215_v40, %v262_v56  ;;  %195 = vperm.xlu0 %1415, %v192_v7   ;;  %v1693_v13 = vpack.c.bf16 %v266_v58, %v262_v56  ;;  %v274_v15 = vand.u32 4294901760, %v221_v61 }
  0x42   : > { %1953 = vst [vmem:[#allocation15_spill] sm:$0xff] %v1682_v8  ;;  %1179 = vmatpush1.bf16.msra.mxu1 %v1657_v51  ;;  %1275 = vmatpush1.bf16.msra.mxu0 %v1657_v51  ;;  %v1695_v14 = vsub.f32 %v217_v45, %v266_v58  ;;  %v272_v16 = vand.u32 4294901760, %v218_v62  ;;  %v1700_v19 = vpack.c.bf16 %v268_v60, %v264_v59  ;;  %v276_v20 = vand.u32 4294901760, %v220_v63  ;;  %v228_v45 = vld [vmem:[%s1593_s28 + $0xf0] sm:$0xff] }
  0x43   : > { %1954 = vst [vmem:[#allocation16_spill] sm:$0xff] %v1693_v13  ;;  %1181 = vmatprep.subr.bf16.mxu1 %v1666_v57  ;;  %1277 = vmatprep.subr.bf16.mxu0 %v1666_v57  ;;  %v278_v24 = vand.u32 4294901760, %v223_v5  ;;  %v282_v25 = vand.u32 4294901760, %v225_v6  ;;  %v1702_v27 = vsub.f32 %v214_v46, %v264_v59  ;;  %v1704_v28 = vsub.f32 %v216_v47, %v268_v60  ;;  %v191_v46 = vld [vmem:[%s1913_s1] sm:$0x3f] }
  0x44   : > { %1955 = vst [vmem:[#allocation17_spill] sm:$0xff] %v1700_v19  ;;  %v1706_v29 = vsub.f32 %v219_v52, %v270_v4  ;;  %v280_v31 = vand.u32 4294901760, %v222_v12  ;;  %v1711_v37 = vpack.c.bf16 %v274_v15, %v270_v4  ;;  %v1713_v38 = vsub.f32 %v221_v61, %v274_v15 }
  0x45   : > { %v1715_v39 = vsub.f32 %v218_v62, %v272_v16  ;;  %v284_v40 = vand.u32 4294901760, %v224_v18  ;;  %v1723_v47 = vpack.c.bf16 %v276_v20, %v272_v16  ;;  %v1725_v52 = vsub.f32 %v220_v63, %v276_v20 }
  0x46   : > { %1956 = vst [vmem:[#allocation18_spill] sm:$0xff] %v1706_v29  ;;  %1957 = vst [vmem:[#allocation19_spill] sm:$0xff] %v1711_v37  ;;  %1183 = vmatpush1.bf16.msra.mxu1 %v1682_v8  ;;  %1279 = vmatpush1.bf16.msra.mxu0 %v1682_v8  ;;  %v1727_v54 = vpack.c.bf16 %v282_v25, %v278_v24  ;;  %v1731_v55 = vsub.f32 %v223_v5, %v278_v24  ;;  %v286_v56 = vand.u32 4294901760, %v227_v32 }
  0x47   : > { %1958 = vst [vmem:[#allocation20_spill] sm:$0xff] %v1723_v47  ;;  %1185 = vmatprep.subr.bf16.mxu1 %v1693_v13  ;;  %1281 = vmatprep.subr.bf16.mxu0 %v1693_v13  ;;  %v290_v58 = vand.u32 4294901760, %v229_v33  ;;  %v288_v59 = vand.u32 4294901760, %v226_v36  ;;  %v292_v60 = vand.u32 4294901760, %v228_v45  ;;  %v340_v61 = vand.u32 4294901760, %v1615_v21 }
  0x48   : > { %1959 = vst [vmem:[#allocation21_spill] sm:$0xff] %v1727_v54  ;;  %1960 = vst [vmem:[#allocation22_spill] sm:$0xff] %v1731_v55  ;;  %v352_v62 = vand.u32 4294901760, %v1624_v26  ;;  %v1735_v4 = vand.u32 4294901760, %v191_v46  ;;  %v1737_v63 = vsub.f32 %v225_v6, %v282_v25  ;;  %v1739_v7 = vpack.c.bf16 %v284_v40, %v280_v31 }
  0x49   : > { %v1741_v15 = vsub.f32 %v222_v12, %v280_v31  ;;  %v1743_v16 = vsub.f32 %v224_v18, %v284_v40  ;;  %v1747_v5 = vsub.f32 %v227_v32, %v286_v56  ;;  %v341_v20 = vsub.f32 %v1615_v21, %v340_v61 }
  0x4a   : > { %1961 = vst [vmem:[#allocation23_spill] sm:$0xff] %v1739_v7  ;;  %1187 = vmatpush1.bf16.msra.mxu1 %v1700_v19  ;;  %1283 = vmatpush1.bf16.msra.mxu0 %v1700_v19  ;;  %v353_v24 = vsub.f32 %v1624_v26, %v352_v62  ;;  %v346_v0 = vand.u32 4294901760, %v1628_v30  ;;  %v1754_v6 = vpack.c.bf16 %v290_v58, %v286_v56  ;;  %v358_v18 = vand.u32 4294901760, %v1631_v34 }
  0x4b   : > { %1189 = vmatprep.subr.bf16.mxu1 %v1711_v37  ;;  %1285 = vmatprep.subr.bf16.mxu0 %v1711_v37  ;;  %v1757_v12 = vsub.f32 %v191_v46, %v1735_v4  ;;  %v364_v25 = vand.u32 4294901760, %v1640_v41  ;;  %v1761_v31 = vsub.f32 %v229_v33, %v290_v58  ;;  %v1763_v32 = vpack.c.bf16 %v292_v60, %v288_v59 }
  0x4c   : > { %1962 = vst [vmem:[#allocation24_spill] sm:$0xff] %v1754_v6  ;;  %v347_v40 = vsub.f32 %v1628_v30, %v346_v0  ;;  %v376_v19 = vand.u32 4294901760, %v1642_v42  ;;  %v1767_v13 = vsub.f32 %v226_v36, %v288_v59  ;;  %v359_v37 = vsub.f32 %v1631_v34, %v358_v18 }
  0x4d   : > { %1963 = vst [vmem:[#allocation25_spill] sm:$0xff] %v1757_v12  ;;  %1964 = vst [vmem:[#allocation26_spill] sm:$0xff] %v1763_v32  ;;  %v329_v56 = vand.u32 4294901760, %v1757_v12  ;;  %v365_v46 = vsub.f32 %v1640_v41, %v364_v25  ;;  %v1774_v33 = vsub.f32 %v228_v45, %v292_v60  ;;  %v342_v58 = vand.u32 4294901760, %v341_v20 }
  0x4e   : > { %1191 = vmatpush1.bf16.msra.mxu1 %v1723_v47  ;;  %1287 = vmatpush1.bf16.msra.mxu0 %v1723_v47  ;;  %v354_v8 = vand.u32 4294901760, %v353_v24  ;;  %v377_v57 = vsub.f32 %v1642_v42, %v376_v19  ;;  %v1296_v36 = vpack.c.bf16 %v352_v62, %v340_v61  ;;  %v348_v51 = vand.u32 4294901760, %v347_v40 }
  0x4f   : > { %1193 = vmatprep.subr.bf16.mxu1 %v1727_v54  ;;  %1289 = vmatprep.subr.bf16.mxu0 %v1727_v54  ;;  %v330_v59 = vsub.f32 %v1757_v12, %v329_v56  ;;  %v370_v44 = vand.u32 4294901760, %v1644_v43  ;;  %v360_v35 = vand.u32 4294901760, %v359_v37  ;;  %v382_v23 = vand.u32 4294901760, %v1651_v48 }
  0x50   : > { %v388_v45 = vand.u32 4294901760, %v1653_v49  ;;  %v400_v60 = vand.u32 4294901760, %v1655_v50  ;;  %v1298_v20 = vpack.c.bf16 %v358_v18, %v346_v0  ;;  %v366_v24 = vand.u32 4294901760, %v365_v46 }
  0x51   : > { %v378_v47 = vand.u32 4294901760, %v377_v57  ;;  %v394_v22 = vand.u32 4294901760, %v1662_v53  ;;  %v1200_v61 = vpack.c.bf16 %v354_v8, %v342_v58  ;;  %v371_v62 = vsub.f32 %v1644_v43, %v370_v44 }
  0x52   : > { %1195 = vmatpush1.bf16.msra.mxu1 %v1739_v7  ;;  %1291 = vmatpush1.bf16.msra.mxu0 %v1739_v7  ;;  %v383_v37 = vsub.f32 %v1651_v48, %v382_v23  ;;  %v406_v40 = vand.u32 4294901760, %v1671_v1  ;;  %v1300_v0 = vpack.c.bf16 %v376_v19, %v364_v25  ;;  %v389_v57 = vsub.f32 %v1653_v49, %v388_v45 }
  0x53   : > { %1197 = vmatprep.subr.bf16.mxu1 %v1754_v6  ;;  %1293 = vmatprep.subr.bf16.mxu0 %v1754_v6  ;;  %v401_v18 = vsub.f32 %v1655_v50, %v400_v60  ;;  %v331_v46 = vand.u32 4294901760, %v330_v59  ;;  %v1202_v12 = vpack.c.bf16 %v360_v35, %v348_v51  ;;  %v395_v7 = vsub.f32 %v1662_v53, %v394_v22 }
  0x54   : > { %v407_v8 = vsub.f32 %v1671_v1, %v406_v40  ;;  %v1204_v58 = vpack.c.bf16 %v378_v47, %v366_v24  ;;  %v1302_v54 = vpack.c.bf16 %v382_v23, %v370_v44  ;;  %v412_v48 = vand.u32 4294901760, %v1673_v2 }
  0x55   : > { %v424_v43 = vand.u32 4294901760, %v1675_v3  ;;  %v372_v19 = vand.u32 4294901760, %v371_v62  ;;  %v384_v25 = vand.u32 4294901760, %v383_v37  ;;  %v390_v6 = vand.u32 4294901760, %v389_v57 }
  0x56   : > { %1199 = vmatpush1.bf16.msra.mxu1 %v1763_v32  ;;  %1295 = vmatpush1.bf16.msra.mxu0 %v1763_v32  ;;  %v418_v59 = vand.u32 4294901760, %v1684_v9  ;;  %v402_v35 = vand.u32 4294901760, %v401_v18  ;;  %v413_v51 = vsub.f32 %v1673_v2, %v412_v48  ;;  %v430_v44 = vand.u32 4294901760, %v1686_v10 }
  0x57   : > { %1201 = vmatprep.subr.bf16.mxu1 %v1200_v61  ;;  %1297 = vmatprep.subr.bf16.mxu0 %v1296_v36  ;;  %v425_v23 = vsub.f32 %v1675_v3, %v424_v43  ;;  %v1304_v47 = vpack.c.bf16 %v400_v60, %v388_v45  ;;  %v396_v24 = vand.u32 4294901760, %v395_v7  ;;  %v408_v1 = vand.u32 4294901760, %v407_v8 }
  0x58   : > { %v436_v53 = vand.u32 4294901760, %v1688_v11  ;;  %v1306_v62 = vpack.c.bf16 %v406_v40, %v394_v22  ;;  %v414_v37 = vand.u32 4294901760, %v413_v51  ;;  %v419_v61 = vsub.f32 %v1684_v9, %v418_v59 }
  0x59   : > { %332 = vmatmul.mubr.f32.vlgmr.msra.gmra.mrb[0].mxu1 %v331_v46  ;;  %807 = vmatmul.mubr.f32.vlgmr.msra.gmra.mrb[0].mxu0 %v329_v56  ;;  %v426_v57 = vand.u32 4294901760, %v425_v23  ;;  %v1206_v36 = vpack.c.bf16 %v384_v25, %v372_v19  ;;  %v431_v18 = vsub.f32 %v1686_v10, %v430_v44  ;;  %v448_v32 = vand.u32 4294901760, %v1695_v14 }
  0x5a   : > { %1203 = vmatpush1.bf16.msra.mxu1 %v1202_v12  ;;  %1299 = vmatpush1.bf16.msra.mxu0 %v1298_v20  ;;  %v442_v45 = vand.u32 4294901760, %v1702_v27  ;;  %v1208_v7 = vpack.c.bf16 %v402_v35, %v390_v6  ;;  %v437_v60 = vsub.f32 %v1688_v11, %v436_v53  ;;  %v454_v22 = vand.u32 4294901760, %v1704_v28 }
  0x5b   : > { %1205 = vmatprep.subr.bf16.mxu1 %v1204_v58  ;;  %1301 = vmatprep.subr.bf16.mxu0 %v1300_v0  ;;  %v460_v56 = vand.u32 4294901760, %v1706_v29  ;;  %v1210_v40 = vpack.c.bf16 %v408_v1, %v396_v24  ;;  %v449_v12 = vsub.f32 %v1695_v14, %v448_v32  ;;  %v1965_v46 = vmov 0.0  }
  0x5c   : > { %v443_v20 = vsub.f32 %v1702_v27, %v442_v45  ;;  %562 = vmatprep.mubr.f32.mxu1 %v1965_v46  ;;  %973 = vmatprep.mubr.f32.mxu0 %v1965_v46  ;;  %v1212_v8 = vpack.c.bf16 %v426_v57, %v414_v37  ;;  %v1308_v19 = vpack.c.bf16 %v424_v43, %v412_v48  ;;  %v420_v58 = vand.u32 4294901760, %v419_v61 }
  0x5d   : > { %v455_v6 = vsub.f32 %v1704_v28, %v454_v22  ;;  %v432_v0 = vand.u32 4294901760, %v431_v18  ;;  %v461_v25 = vsub.f32 %v1706_v29, %v460_v56  ;;  %v472_v1 = vand.u32 4294901760, %v1713_v38 }
  0x5e   : > { %1207 = vmatpush1.bf16.msra.mxu1 %v1206_v36  ;;  %1303 = vmatpush1.bf16.msra.mxu0 %v1302_v54  ;;  %v466_v35 = vand.u32 4294901760, %v1715_v39  ;;  %v438_v51 = vand.u32 4294901760, %v437_v60  ;;  %v450_v23 = vand.u32 4294901760, %v449_v12  ;;  %v478_v24 = vand.u32 4294901760, %v1725_v52 }
  0x5f   : > { %1209 = vmatprep.subr.bf16.mxu1 %v1208_v7  ;;  %1305 = vmatprep.subr.bf16.mxu0 %v1304_v47  ;;  %v484_v43 = vand.u32 4294901760, %v1731_v55  ;;  %v1310_v48 = vpack.c.bf16 %v430_v44, %v418_v59  ;;  %v1312_v37 = vpack.c.bf16 %v448_v32, %v436_v53  ;;  %v444_v57 = vand.u32 4294901760, %v443_v20 }
  0x60   : > { %v473_v54 = vsub.f32 %v1713_v38, %v472_v1  ;;  %v456_v61 = vand.u32 4294901760, %v455_v6  ;;  %v467_v36 = vsub.f32 %v1715_v39, %v466_v35  ;;  %v479_v18 = vsub.f32 %v1725_v52, %v478_v24 }
  0x61   : > { %v485_v29 = vsub.f32 %v1731_v55, %v484_v43  ;;  %v1214_v47 = vpack.c.bf16 %v432_v0, %v420_v58  ;;  %v462_v7 = vand.u32 4294901760, %v461_v25  ;;  %v496_v60 = vand.u32 4294901760, %v1737_v63 }
  0x62   : > { %1211 = vmatpush1.bf16.msra.mxu1 %v1210_v40  ;;  %1307 = vmatpush1.bf16.msra.mxu0 %v1306_v62  ;;  %v490_v12 = vand.u32 4294901760, %v1741_v15  ;;  %v1216_v53 = vpack.c.bf16 %v450_v23, %v438_v51  ;;  %v474_v32 = vand.u32 4294901760, %v473_v54  ;;  %v502_v59 = vand.u32 4294901760, %v1743_v16 }
  0x63   : > { %1213 = vmatprep.subr.bf16.mxu1 %v1212_v8  ;;  %1309 = vmatprep.subr.bf16.mxu0 %v1308_v19  ;;  %v508_v44 = vand.u32 4294901760, %v1747_v5  ;;  %v1314_v20 = vpack.c.bf16 %v454_v22, %v442_v45  ;;  %v1316_v6 = vpack.c.bf16 %v472_v1, %v460_v56  ;;  %v497_v55 = vsub.f32 %v1737_v63, %v496_v60 }
  0x64   : > { %v1218_v40 = vpack.c.bf16 %v456_v61, %v444_v57  ;;  %v468_v62 = vand.u32 4294901760, %v467_v36  ;;  %v480_v58 = vand.u32 4294901760, %v479_v18  ;;  %v486_v0 = vand.u32 4294901760, %v485_v29 }
  0x65   : > { %v491_v25 = vsub.f32 %v1741_v15, %v490_v12  ;;  %v503_v8 = vsub.f32 %v1743_v16, %v502_v59  ;;  %v520_v19 = vand.u32 4294901760, %v1761_v31  ;;  %v514_v51 = vand.u32 4294901760, %v1767_v13 }
  0x66   : > { %1215 = vmatpush1.bf16.msra.mxu1 %v1214_v47  ;;  %1311 = vmatpush1.bf16.msra.mxu0 %v1310_v48  ;;  %v1220_v45 = vpack.c.bf16 %v474_v32, %v462_v7  ;;  %v498_v22 = vand.u32 4294901760, %v497_v55  ;;  %v509_v56 = vsub.f32 %v1747_v5, %v508_v44  ;;  %v526_v1 = vand.u32 4294901760, %v1774_v33 }
  0x67   : > { %1217 = vmatprep.subr.bf16.mxu1 %v1216_v53  ;;  %1313 = vmatprep.subr.bf16.mxu0 %v1312_v37  ;;  %v521_v29 = vsub.f32 %v1761_v31, %v520_v19  ;;  %v1222_v23 = vpack.c.bf16 %v480_v58, %v468_v62  ;;  %v1318_v48 = vpack.c.bf16 %v478_v24, %v466_v35  ;;  %v492_v57 = vand.u32 4294901760, %v491_v25  ;;  %v1973_v58 = vld [vmem:[#allocation9_spill] sm:$0xff]  ;;  %v1974_v25 = vld [vmem:[#allocation11_spill] sm:$0xff] }
  0x68   : > { %v504_v54 = vand.u32 4294901760, %v503_v8  ;;  %v515_v61 = vsub.f32 %v1767_v13, %v514_v51  ;;  %v527_v36 = vsub.f32 %v1774_v33, %v526_v1  ;;  %v1224_v37 = vpack.c.bf16 %v498_v22, %v486_v0  ;;  %v1976_v8 = vld [vmem:[#allocation15_spill] sm:$0xff]  ;;  %v1985_v22 = vld [vmem:[#allocation24_spill] sm:$0xff] }
  0x69   : > { %v1320_v55 = vpack.c.bf16 %v496_v60, %v484_v43  ;;  %v510_v18 = vand.u32 4294901760, %v509_v56  ;;  %v522_v47 = vand.u32 4294901760, %v521_v29  ;;  %v1322_v53 = vpack.c.bf16 %v502_v59, %v490_v12  ;;  %v1966_v59 = vld [vmem:[#allocation5_spill] sm:$0xff]  ;;  %v1986_v56 = vld [vmem:[#allocation26_spill] sm:$0xff] }
  0x6a   : > { %1219 = vmatpush1.bf16.msra.mxu1 %v1218_v40  ;;  %1315 = vmatpush1.bf16.msra.mxu0 %v1314_v20  ;;  %v1226_v7 = vpack.c.bf16 %v504_v54, %v492_v57  ;;  %v516_v32 = vand.u32 4294901760, %v515_v61  ;;  %v528_v35 = vand.u32 4294901760, %v527_v36  ;;  %v1324_v20 = vpack.c.bf16 %v520_v19, %v508_v44  ;;  %v1967_v44 = vld [vmem:[#allocation8_spill] sm:$0xff] }
  0x6b   : > { %1221 = vmatprep.subr.bf16.mxu1 %v1220_v45  ;;  %1317 = vmatprep.subr.bf16.mxu0 %v1316_v6  ;;  %v1228_v24 = vpack.c.bf16 %v522_v47, %v510_v18  ;;  %v1326_v62 = vpack.c.bf16 %v526_v1, %v514_v51  ;;  %v1232_v43 = vpack.c.bf16 %v1624_v26, %v1615_v21  ;;  %v1968_v21 = vld [vmem:[#allocation10_spill] sm:$0xff]  ;;  %v1987_v1 = vld [vmem:[#allocation25_spill] sm:$0xff] }
  0x6c   : > { %v1230_v40 = vpack.c.bf16 %v528_v35, %v516_v32  ;;  %v1234_v60 = vpack.c.bf16 %v1631_v34, %v1628_v30  ;;  %v1236_v12 = vpack.c.bf16 %v1642_v42, %v1640_v41  ;;  %v1238_v26 = vpack.c.bf16 %v1968_v21, %v1967_v44  ;;  %v1969_v6 = vld [vmem:[#allocation6_spill] sm:$0xff]  ;;  %v1971_v34 = vld [vmem:[#allocation12_spill] sm:$0xff] }
  0x6d   : > { %v1240_v30 = vpack.c.bf16 %v1655_v50, %v1653_v49  ;;  %v1972_v41 = vld [vmem:[#allocation14_spill] sm:$0xff]  ;;  %v1244_v0 = vpack.c.bf16 %v1675_v3, %v1673_v2  ;;  %v1246_v49 = vpack.c.bf16 %v1686_v10, %v1684_v9  ;;  %v1975_v50 = vld [vmem:[#allocation13_spill] sm:$0xff]  ;;  %v1250_v19 = vpack.c.bf16 %v1704_v28, %v1702_v27  ;;  %v1977_v2 = vld [vmem:[#allocation16_spill] sm:$0xff] }
  0x6e   : > { %1223 = vmatpush1.bf16.msra.mxu1 %v1222_v23  ;;  %1319 = vmatpush1.bf16.msra.mxu0 %v1318_v48  ;;  %v1242_v42 = vpack.c.bf16 %v1972_v41, %v1971_v34  ;;  %v1978_v3 = vld [vmem:[#allocation18_spill] sm:$0xff]  ;;  %v1979_v9 = vld [vmem:[#allocation17_spill] sm:$0xff]  ;;  %v1254_v10 = vpack.c.bf16 %v1725_v52, %v1715_v39  ;;  %v1982_v27 = vld [vmem:[#allocation20_spill] sm:$0xff]  ;;  %v1258_v28 = vpack.c.bf16 %v1743_v16, %v1741_v15 }
  0x6f   : > { %1225 = vmatprep.subr.bf16.mxu1 %v1224_v37  ;;  %1321 = vmatprep.subr.bf16.mxu0 %v1320_v55  ;;  %v1252_v51 = vpack.c.bf16 %v1713_v38, %v1978_v3  ;;  %v1983_v38 = vld [vmem:[#allocation21_spill] sm:$0xff]  ;;  %v1260_v39 = vpack.c.bf16 %v1761_v31, %v1747_v5  ;;  %v1984_v52 = vld [vmem:[#allocation23_spill] sm:$0xff] }
  0x72   : > { %1227 = vmatpush1.bf16.msra.mxu1 %v1226_v7  ;;  %1323 = vmatpush1.bf16.msra.mxu0 %v1322_v53 }
  0x73   : > { %1229 = vmatprep.subr.bf16.mxu1 %v1228_v24  ;;  %1325 = vmatprep.subr.bf16.mxu0 %v1324_v20 }
  0x76   : > { %1231 = vmatpush1.bf16.msra.mxu1 %v1230_v40  ;;  %1327 = vmatpush1.bf16.msra.mxu0 %v1326_v62 }
  0x77   : > { %1233 = vmatprep.subr.bf16.mxu1 %v1232_v43  ;;  %1329 = vmatprep.subr.bf16.mxu0 %v1610_v17  ;;  %v1970_v17 = vld [vmem:[#allocation7_spill] sm:$0xff] }
  0x79   : > { %564 = vmatmul.mubr.f32.vlgmr.msra.gmra.mrb[0].mxu1 %v1735_v4  ;;  %975 = vmatmul.mubr.f32.vlgmr.msra.gmra.mrb[0].mxu0 %v1735_v4 }
  0x7a   : > { %1235 = vmatpush1.bf16.msra.mxu1 %v1234_v60  ;;  %1331 = vmatpush1.bf16.msra.mxu0 %v1966_v59 }
  0x7b   : > { %1237 = vmatprep.subr.bf16.mxu1 %v1236_v12  ;;  %1333 = vmatprep.subr.bf16.mxu0 %v1969_v6 }
  0x7c   : > { %698 = vmatprep.mubr.f32.mxu1 %v1965_v46  ;;  %1077 = vmatprep.mubr.f32.mxu0 %v1965_v46  ;;  %v1248_v46 = vpack.c.bf16 %v1695_v14, %v1688_v11  ;;  %v1980_v11 = vld [vmem:[#allocation19_spill] sm:$0xff]  ;;  %v1981_v14 = vld [vmem:[#allocation22_spill] sm:$0xff] }
  0x7d   : > { %v1256_v45 = vpack.c.bf16 %v1737_v63, %v1981_v14  ;;  %v1262_v63 = vpack.c.bf16 %v1774_v33, %v1767_v13 }
  0x7e   : > { %1239 = vmatpush1.bf16.msra.mxu1 %v1238_v26  ;;  %1335 = vmatpush1.bf16.msra.mxu0 %v1970_v17 }
  0x7f   : > { %1241 = vmatprep.subr.bf16.mxu1 %v1240_v30  ;;  %1337 = vmatprep.subr.bf16.mxu0 %v1973_v58 }
  0x82   : > { %1243 = vmatpush1.bf16.msra.mxu1 %v1242_v42  ;;  %1339 = vmatpush1.bf16.msra.mxu0 %v1974_v25 }
  0x83   : > { %1245 = vmatprep.subr.bf16.mxu1 %v1244_v0  ;;  %1341 = vmatprep.subr.bf16.mxu0 %v1975_v50 }
  0x86   : > { %1247 = vmatpush1.bf16.msra.mxu1 %v1246_v49  ;;  %1343 = vmatpush1.bf16.msra.mxu0 %v1976_v8 }
  0x87   : > { %1249 = vmatprep.subr.bf16.mxu1 %v1248_v46  ;;  %1345 = vmatprep.subr.bf16.mxu0 %v1977_v2 }
  0x8a   : > { %1251 = vmatpush1.bf16.msra.mxu1 %v1250_v19  ;;  %1347 = vmatpush1.bf16.msra.mxu0 %v1979_v9 }
  0x8b   : > { %1253 = vmatprep.subr.bf16.mxu1 %v1252_v51  ;;  %1349 = vmatprep.subr.bf16.mxu0 %v1980_v11 }
  0x8e   : > { %1255 = vmatpush1.bf16.msra.mxu1 %v1254_v10  ;;  %1351 = vmatpush1.bf16.msra.mxu0 %v1982_v27 }
  0x8f   : > { %1257 = vmatprep.subr.bf16.mxu1 %v1256_v45  ;;  %1353 = vmatprep.subr.bf16.mxu0 %v1983_v38 }
  0x92   : > { %1259 = vmatpush1.bf16.msra.mxu1 %v1258_v28  ;;  %1355 = vmatpush1.bf16.msra.mxu0 %v1984_v52 }
  0x93   : > { %1261 = vmatprep.subr.bf16.mxu1 %v1260_v39  ;;  %1357 = vmatprep.subr.bf16.mxu0 %v1985_v22 }
  0x96   : > { %1263 = vmatpush1.bf16.msra.mxu1 %v1262_v63  ;;  %1359 = vmatpush1.bf16.msra.mxu0 %v1986_v56 }
  0x99   : > { %701 = vmatmul.mubr.f32.vlgmr.msra.gmra.mrb[0].mxu1 %v1987_v1  ;;  %1079 = vmatmul.mubr.f32.vlgmr.msra.gmra.mrb[0].mxu0 %v1735_v4 }
  0xc0   : > { %v196_v15 = vpop.permute.xlu0 %195 }
 0x16c   : > { %v702_v16 = vpop.f32.mrb[0].mxu1  ;;  %v1080_v5 = vpop.f32.mrb[0].mxu0 }
 0x16d   : > { %v1360_v31 = vadd.f32 %v702_v16, %v196_v15  ;;  %v704_v29 = vpop.f32.mrb[1].mxu1  ;;  %v1082_v23 = vpop.f32.mrb[1].mxu0 }
 0x16e   : > { %v1362_v13 = vadd.f32 %v704_v29, %v196_v15 }
 0x16f   : > { %v1361_v33 = vadd.f32 %v1360_v31, %v1080_v5 }
 0x170   : > { %v1363_v48 = vadd.f32 %v1362_v13, %v1082_v23 }
 0x171   : > { %1085 = vst [vmem:[%s190_s6] sm:$0x3f] %v1361_v33 }
 0x172   : > { %1086 = vst [vmem:[%s190_s6 + $0x8] sm:$0x3f] %v1363_v48 }
 0x173 PF: > { %p13_p8 = scmp.ge.s32.totalorder %s1529_s17, 4   ;;  %s1988_s12 = smov %s1472_s13 }
 0x174   : > { %s1989_s13 = smov %s1476_s14  ;;  %s1990_s14 = smov %s1539_s20 }
 0x175   : > { %s1991_s15 = smov %s1529_s17  ;;  %15 = sbr.rel (!%p13_p8) target bundleno = 3 (0x3), region = 72 }
 0x17c   :  { %1108 = vsyncpa [#allocation3], 1 }
 0x17d   :  { %1110 = vsyncpa [#allocation3 + $0x1], 1 }

</bundles_post_ra>
